<compile_context>
chip_gen: v7x
topology: tpu7x:2x2x1
jax: 0.10.0
libtpu: 0.0.40
codegen_flags: <defaults>
</compile_context>

<pallas_src>
import jax
import jax.numpy as jnp
from jax.experimental import pallas as pl
from jax.experimental.pallas import tpu as pltpu

OBS_DIM = 4      # environments.CartPole.OBSERVATION_SPACE
HID_DIM = 100    # linear_1.out_features == linear_2.out_features
HID_PAD = 128    # lane-dense hidden width (full MXU tile, unmasked vst)
ROW_TILE = 256   # row tile for the large-batch parallel grid (v7x 2-TC path)


def _mlp_kernel(x_ref, w1_ref, b1_ref, w2_ref, b2_ref, o_ref):
    # Hot path: two MXU matmuls + bias + ReLU on the VPU, everything f32 in VMEM.
    h = jnp.dot(x_ref[...], w1_ref[...], preferred_element_type=jnp.float32)
    h = jnp.maximum(h + b1_ref[...], 0.0)
    y = jnp.dot(h, w2_ref[...], preferred_element_type=jnp.float32)
    o_ref[...] = jnp.maximum(y + b2_ref[...], 0.0)


def pad_params(w1, b1, w2, b2):
    """One-time padding of params to lane-dense shapes. Call at init, NOT per forward.

    Padded columns/rows and bias lanes are exact zeros, so padded output lanes
    carry exact zeros through both ReLUs.
    """
    cpad = HID_PAD - HID_DIM
    w1_p = jnp.pad(w1, ((0, 0), (0, cpad)))          # (4, 128)
    b1_p = jnp.pad(b1, ((0, 0), (0, cpad)))          # (1, 128)
    w2_p = jnp.pad(w2, ((0, cpad), (0, cpad)))       # (128, 128)
    b2_p = jnp.pad(b2, ((0, 0), (0, cpad)))          # (1, 128)
    return w1_p, b1_p, w2_p, b2_p


def nn_forward(x, padded_params):
    """x: [B, OBS_DIM] f32, padded_params from pad_params().

    Returns [B, HID_PAD] f32; columns >= HID_DIM are exactly zero (lane-dense
    layout kept for downstream consumers — slice at the last possible point).
    """
    w1_p, b1_p, w2_p, b2_p = padded_params
    B = x.shape[0]

    if B > ROW_TILE and B % ROW_TILE == 0:
        # Large batch: parallel row grid, weights resident per TC (v7x: both TCs).
        grid = (B // ROW_TILE,)
        x_spec = pl.BlockSpec((ROW_TILE, OBS_DIM), lambda i: (i, 0))
        out_spec = pl.BlockSpec((ROW_TILE, HID_PAD), lambda i: (i, 0))
        const = lambda i: (0, 0)
        compiler_params = pltpu.CompilerParams(dimension_semantics=("parallel",))
    else:
        # Small batch (latency/overhead-bound): single program, block == full array.
        grid = ()
        x_spec = pl.BlockSpec(x.shape, lambda: (0, 0))
        out_spec = pl.BlockSpec((B, HID_PAD), lambda: (0, 0))
        const = lambda: (0, 0)
        compiler_params = None

    return pl.pallas_call(
        _mlp_kernel,
        out_shape=jax.ShapeDtypeStruct((B, HID_PAD), jnp.float32),
        grid=grid,
        in_specs=[
            x_spec,
            pl.BlockSpec(w1_p.shape, const),
            pl.BlockSpec(b1_p.shape, const),
            pl.BlockSpec(w2_p.shape, const),
            pl.BlockSpec(b2_p.shape, const),
        ],
        out_specs=out_spec,
        compiler_params=compiler_params,
    )(x, w1_p, b1_p, w2_p, b2_p)


def init_params(key):
    # PyTorch Linear shapes: linear_1 [100, 4] + [100], linear_2 [100, 100] + [100].
    # Stored transposed ([in, out]) so the kernel computes y = x @ W + b directly.
    k1, k2, k3, k4 = jax.random.split(key, 4)
    bound1 = 1.0 / jnp.sqrt(OBS_DIM)
    bound2 = 1.0 / jnp.sqrt(HID_DIM)
    w1 = jax.random.uniform(k1, (OBS_DIM, HID_DIM), jnp.float32, -bound1, bound1)
    b1 = jax.random.uniform(k2, (1, HID_DIM), jnp.float32, -bound1, bound1)
    w2 = jax.random.uniform(k3, (HID_DIM, HID_DIM), jnp.float32, -bound2, bound2)
    b2 = jax.random.uniform(k4, (1, HID_DIM), jnp.float32, -bound2, bound2)
    return w1, b1, w2, b2


def reference_forward(x, w1, b1, w2, b2):
    h = jnp.maximum(x @ w1 + b1, 0.0)
    return jnp.maximum(h @ w2 + b2, 0.0)


if __name__ == "__main__":
    key = jax.random.PRNGKey(0)
    kx, kp = jax.random.split(key)
    B = 8
    x = jax.random.normal(kx, (B, OBS_DIM), dtype=jnp.float32)

    w1, b1, w2, b2 = init_params(kp)
    padded_params = pad_params(w1, b1, w2, b2)        # padded once, reused per call
    padded_params = jax.block_until_ready(padded_params)

    out = nn_forward(x, padded_params)
    out = jax.block_until_ready(out)

    ref = reference_forward(x, w1, b1, w2, b2)
    assert out.shape == (B, HID_PAD)
    # Padded lanes are exact zeros; slice only here, at the last possible point.
    assert jnp.allclose(out[:, :HID_DIM], ref, atol=1e-5, rtol=1e-5)
    assert jnp.all(out[:, HID_DIM:] == 0.0)
    print("KERNEL_OK")
</pallas_src>

<mosaic_0001>
module attributes {stable_mosaic.version = 11 : i64} {
  func.func @_mlp_kernel(%arg0: memref<8x4xf32, #tpu.memory_space<vmem>>, %arg1: memref<4x128xf32, #tpu.memory_space<vmem>>, %arg2: memref<1x128xf32, #tpu.memory_space<vmem>>, %arg3: memref<128x128xf32, #tpu.memory_space<vmem>>, %arg4: memref<1x128xf32, #tpu.memory_space<vmem>>, %arg5: memref<8x128xf32, #tpu.memory_space<vmem>>) attributes {dimension_semantics = [], scalar_prefetch = 0 : i64, scratch_operands = 0 : i64, tpu.core_type = #tpu.core_type<tc>} {
    %c0 = arith.constant 0 : index
    %c0_0 = arith.constant 0 : index
    %0 = vector.load %arg0[%c0, %c0_0] : memref<8x4xf32, #tpu.memory_space<vmem>>, vector<8x4xf32>
    %c0_1 = arith.constant 0 : index
    %c0_2 = arith.constant 0 : index
    %1 = vector.load %arg1[%c0_1, %c0_2] : memref<4x128xf32, #tpu.memory_space<vmem>>, vector<4x128xf32>
    %cst = arith.constant dense<0.000000e+00> : vector<8x128xf32>
    %2 = tpu.matmul %0, %1, %cst {dimension_numbers = #tpu.dot_dimension_numbers<[1], [0], [0], [1], [0, 0, 1, 1], [], []>} : vector<8x4xf32>, vector<4x128xf32>, vector<8x128xf32> -> vector<8x128xf32>
    %c0_3 = arith.constant 0 : index
    %c0_4 = arith.constant 0 : index
    %3 = vector.load %arg2[%c0_3, %c0_4] : memref<1x128xf32, #tpu.memory_space<vmem>>, vector<1x128xf32>
    %4 = vector.broadcast %3 : vector<1x128xf32> to vector<8x128xf32>
    %5 = arith.addf %2, %4 : vector<8x128xf32>
    %cst_5 = arith.constant 0.000000e+00 : f32
    %6 = vector.broadcast %cst_5 : f32 to vector<8x128xf32>
    %7 = arith.maximumf %5, %6 : vector<8x128xf32>
    %c0_6 = arith.constant 0 : index
    %c0_7 = arith.constant 0 : index
    %8 = vector.load %arg3[%c0_6, %c0_7] : memref<128x128xf32, #tpu.memory_space<vmem>>, vector<128x128xf32>
    %cst_8 = arith.constant dense<0.000000e+00> : vector<8x128xf32>
    %9 = tpu.matmul %7, %8, %cst_8 {dimension_numbers = #tpu.dot_dimension_numbers<[1], [0], [0], [1], [0, 0, 1, 1], [], []>} : vector<8x128xf32>, vector<128x128xf32>, vector<8x128xf32> -> vector<8x128xf32>
    %c0_9 = arith.constant 0 : index
    %c0_10 = arith.constant 0 : index
    %10 = vector.load %arg4[%c0_9, %c0_10] : memref<1x128xf32, #tpu.memory_space<vmem>>, vector<1x128xf32>
    %11 = vector.broadcast %10 : vector<1x128xf32> to vector<8x128xf32>
    %12 = arith.addf %9, %11 : vector<8x128xf32>
    %cst_11 = arith.constant 0.000000e+00 : f32
    %13 = vector.broadcast %cst_11 : f32 to vector<8x128xf32>
    %14 = arith.maximumf %12, %13 : vector<8x128xf32>
    %c0_12 = arith.constant 0 : index
    %c0_13 = arith.constant 0 : index
    %15 = vector.load %arg5[%c0_12, %c0_13] : memref<8x128xf32, #tpu.memory_space<vmem>>, vector<8x128xf32>
    tpu.vector_store %arg5[%c0_12, %c0_13], %14 {strides = array<i32>} : memref<8x128xf32, #tpu.memory_space<vmem>>, vector<8x128xf32>,
    return
  }
}

</mosaic_0001>

<bundles_post_ra>
// kernel: tpu_custom_call.1
= control target key start
LH: loop header
LB: loop body
LE: loop exit
PB: predicated region body
PF: predicated region fallthrough
CT: control target
= control target key end

     0   :  { %10 = vsyncpa [#allocation3], 0  ;;  %s448_s0 = inlined_call_operand.vmem [shape: f32[8,4], index: 0, kind: input, shape index: {}]   ;;  %s449_s1 = inlined_call_operand.vmem [shape: f32[4,128], index: 1, kind: input, shape index: {}]   ;;  %s450_s2 = inlined_call_operand.vmem [shape: f32[1,128], index: 2, kind: input, shape index: {}]   ;;  %s451_s3 = inlined_call_operand.hbm [shape: f32[128,128], index: 3, kind: input, shape index: {}]   ;;  %s452_s4 = inlined_call_operand.vmem [shape: f32[1,128], index: 4, kind: input, shape index: {}]   ;;  %s453_s5 = inlined_call_operand.hbm [shape: f32[8,128], index: 5, kind: output, shape index: {}]  }
   0x1   :  { %11 = vsyncpa [#allocation4], 0  ;;  %s375_s18 = smov [#allocation2]   ;;  %s327_s22 = scalar_lea.hbm %s451_s3, 2048 }
   0x2   :  { %s23_s19 = sshll.u32 %s375_s18, 4  ;;  %p328_p0 = scmp.ne.s32.totalorder %s451_s3, %s327_s22  ;;  %s24_s19 = int_to_ptr.vmem [resolvable:$true] %s23_s19 }
   0x3   :  { %p331_p1 = scmp.lt.u32.totalorder %s327_s22, %s451_s3 }
   0x5   :  { %p333_p2 = pnand %p331_p1, %p328_p0 }
   0x7   :  { %336 = shalt.err (!%p333_p2)
}
   0x8   :  { %s337_s27 = scalar_lea.vmem %s24_s19, 2048  ;;  %p342_p4 = scmp.lt.s32.totalorder %s24_s19, %s24_s19 }
   0x9   :  { %p338_p3 = scmp.ne.s32.totalorder %s24_s19, %s337_s27  ;;  %p343_p5 = scmp.lt.s32.totalorder %s337_s27, %s337_s27 }
   0xb   :  { %p344_p6 = por %p343_p5, %p342_p4 }
   0xd   :  { %p345_p7 = pnand %p344_p6, %p338_p3 }
   0xf   :  { %348 = shalt.err (!%p345_p7)
}
  0x10   :  { %s376_s28 = smov 128   ;;  %s377_s29 = smov 8  }
  0x11   :  { %29 = dma.hbm_to_vmem [thread:$0]  %s451_s3, 2048, %s24_s19, [#allocation3], %s376_s28, %s376_s28, %s377_s29  }
  0x12   :  { %371 = dma.done.wait [#allocation3], 2048  }
  0x13   :  { %372 = vsyncadd [#allocation3], 4294965248  ;;  %v378_v0 = vmov 0.0   ;;  %vm379_vm0 = vmmov 0   ;;  %v380_v1 = vmov 0.0|0.0   ;;  %vm48_vm1 = vcmask 1043456  }
  0x14   :  { %256 = vmatprep.subr.mxu0 %v378_v0  ;;  %258 = vmatprep.mubr.msk.f32.mxu0 %vm379_vm0, %v378_v0  ;;  %vm44_vm2 = vcmask 31744   ;;  %v36_v2 = vld [vmem:[%s449_s1] sm:$0xf]  ;;  %v124_v5 = vld [vmem:[#allocation2 + $0x8] sm:$0xff]  ;;  %v125_v6 = vld [vmem:[#allocation2 + $0x10] sm:$0xff]  ;;  %s381_s12 = smov [#allocation5]  }
  0x15   :  { %296 = vmatprep.subr.bf16.mxu1 %v380_v1  ;;  %293 = vmatprep.mubr.msk.f32.mxu1 %vm379_vm0, %v378_v0  ;;  %v35_v3 = vld [vmem:[%s448_s0] sm:$0xff]  ;;  %v126_v7 = vld [vmem:[#allocation2 + $0x18] sm:$0xff]  ;;  %v128_v11 = vld [vmem:[#allocation2 + $0x28] sm:$0xff]  ;;  %s224_s13 = sshll.u32 %s381_s12, 4  ;;  %s225_s13 = int_to_ptr.vmem [resolvable:$true] %s224_s13 }
  0x16   :  { %v123_v4 = vld [vmem:[#allocation2] sm:$0xff]  ;;  %257 = vmatpush3.msk.msra.mxu0 %vm48_vm1, %v36_v2  ;;  %v300_v9 = vpack.c.bf16 %v126_v7, %v125_v6  ;;  %v129_v13 = vld [vmem:[#allocation2 + $0x30] sm:$0xff]  ;;  %v130_v14 = vld [vmem:[#allocation2 + $0x38] sm:$0xff]  ;;  %s349_s14 = scalar_lea.vmem %s225_s13, 128  ;;  %p354_p9 = scmp.lt.s32.totalorder %s225_s13, %s225_s13 }
  0x17   :  { %259 = vmatmul.mubr.msk.f32.vlgmr.msra.gmra.mrb[0].mxu0 %vm44_vm2, %v35_v3  ;;  %v297_v8 = vpack.c.bf16 %v124_v5, %v123_v4  ;;  %v127_v10 = vld [vmem:[#allocation2 + $0x20] sm:$0xff]  ;;  %v306_v15 = vpack.c.bf16 %v130_v14, %v129_v13  ;;  %v132_v17 = vld [vmem:[#allocation2 + $0x48] sm:$0xff]  ;;  %v133_v19 = vld [vmem:[#allocation2 + $0x50] sm:$0xff]  ;;  %p350_p8 = scmp.ne.s32.totalorder %s225_s13, %s349_s14  ;;  %p355_p10 = scmp.lt.s32.totalorder %s349_s14, %s349_s14 }
  0x18   :  { %v303_v12 = vpack.c.bf16 %v128_v11, %v127_v10  ;;  %v131_v16 = vld [vmem:[#allocation2 + $0x40] sm:$0xff]  ;;  %v134_v20 = vld [vmem:[#allocation2 + $0x58] sm:$0xff]  ;;  %v136_v23 = vld [vmem:[#allocation2 + $0x68] sm:$0xff] }
  0x19   :  { %298 = vmatpush3.bf16.msra.mxu1 %v297_v8  ;;  %v309_v18 = vpack.c.bf16 %v132_v17, %v131_v16  ;;  %v312_v21 = vpack.c.bf16 %v134_v20, %v133_v19  ;;  %v135_v22 = vld [vmem:[#allocation2 + $0x60] sm:$0xff]  ;;  %v137_v25 = vld [vmem:[#allocation2 + $0x70] sm:$0xff]  ;;  %v138_v26 = vld [vmem:[#allocation2 + $0x78] sm:$0xff]  ;;  %p356_p11 = por %p355_p10, %p354_p9 }
  0x1a   :  { %299 = vmatprep.subr.bf16.mxu1 %v380_v1  ;;  %v315_v24 = vpack.c.bf16 %v136_v23, %v135_v22  ;;  %v318_v27 = vpack.c.bf16 %v138_v26, %v137_v25  ;;  %v233_v28 = vld [vmem:[%s450_s2] ss:$0 sm:$0xff] }
  0x1b   :  { %v236_v33 = vld [vmem:[%s452_s4] ss:$0 sm:$0xff]  ;;  %p357_p12 = pnand %p356_p11, %p350_p8 }
  0x1d   :  { %301 = vmatpush3.bf16.msra.mxu1 %v300_v9 }
  0x1e   :  { %302 = vmatprep.subr.bf16.mxu1 %v380_v1 }
  0x21   :  { %304 = vmatpush3.bf16.msra.mxu1 %v303_v12 }
  0x22   :  { %305 = vmatprep.subr.bf16.mxu1 %v380_v1 }
  0x25   :  { %307 = vmatpush3.bf16.msra.mxu1 %v306_v15 }
  0x26   :  { %308 = vmatprep.subr.bf16.mxu1 %v380_v1 }
  0x29   :  { %310 = vmatpush3.bf16.msra.mxu1 %v309_v18 }
  0x2a   :  { %311 = vmatprep.subr.bf16.mxu1 %v380_v1 }
  0x2d   :  { %313 = vmatpush3.bf16.msra.mxu1 %v312_v21 }
  0x2e   :  { %314 = vmatprep.subr.bf16.mxu1 %v380_v1 }
  0x31   :  { %316 = vmatpush3.bf16.msra.mxu1 %v315_v24 }
  0x32   :  { %317 = vmatprep.subr.bf16.mxu1 %v380_v1 }
  0x35   :  { %319 = vmatpush3.bf16.msra.mxu1 %v318_v27 }
  0xea   :  { %v118_v29 = vpop.f32.mrb[0].mxu0 }
  0xeb   :  { %v119_v30 = vadd.f32 %v233_v28, %v118_v29  ;;  %v260_v31 = vpop.f32.mrb[1].mxu0 }
  0xed   :  { %v122_v32 = vmax.f32 %v119_v30, 0.0 }
  0xef   :  { %294 = vmatmul.mubr.f32.vlgmr.msra.gmra.mrb[0].mxu1 %v122_v32 }
 0x1c2   :  { %v212_v34 = vpop.f32.mrb[0].mxu1 }
 0x1c3   :  { %v213_v35 = vadd.f32 %v236_v33, %v212_v34  ;;  %v295_v36 = vpop.f32.mrb[1].mxu1 }
 0x1c5   :  { %v216_v37 = vmax.f32 %v213_v35, 0.0 }
 0x1c7   :  { %217 = vst [vmem:[#allocation5] sm:$0xff] %v216_v37 }
 0x1c8   :  { %360 = shalt.err (!%p357_p12)
}
 0x1c9   :  { %s361_s16 = scalar_lea.hbm %s453_s5, 128 }
 0x1ca   :  { %p362_p13 = scmp.ne.s32.totalorder %s453_s5, %s361_s16  ;;  %p365_p0 = scmp.lt.u32.totalorder %s361_s16, %s453_s5 }
 0x1cc   :  { %p367_p1 = pnand %p365_p0, %p362_p13 }
 0x1ce   :  { %370 = shalt.err (!%p367_p1)
}
 0x1cf   :  { %227 = dma.vmem_to_hbm [thread:$0]  %s225_s13, 128, %s453_s5, [#allocation4]  }
 0x1d0   :  { %373 = dma.done.wait [#allocation4], 128  }
 0x1d1   :  { %374 = vsyncadd [#allocation4], 4294967168 }
 0x1d2   :  { %231 = vsyncpa [#allocation3], 1 }
 0x1d3   :  { %232 = vsyncpa [#allocation4], 1 }

</bundles_post_ra>
